<compile_context>
chip_gen: v7x
topology: tpu7x:2x2x1
jax: 0.10.0
libtpu: 0.0.40
codegen_flags: <defaults>
</compile_context>

<pallas_src>
import jax
import jax.numpy as jnp
from jax import lax
from jax.experimental import pallas as pl
from jax.experimental.pallas import tpu as pltpu

EPS = 1e-5


# ------------------------- in-kernel helpers -------------------------------

def _conv1d_im2col(xp, w2, b, *, k_taps, l_out):
    """1-D conv in NCL layout as a single batched matmul.

    xp : (N, C, Lp)      already-padded input, Lp >= l_out + k_taps - 1
    w2 : (F, k_taps*C)   weights, tap-major / channel-minor
    b  : (1, F, 1)       conv bias
    returns (N, F, l_out) float32
    """
    n, _, _ = xp.shape
    f, d = w2.shape
    if k_taps == 1:
        cols = xp[:, :, :l_out]                                     # (N, C, l_out)
    else:
        cols = jnp.concatenate(
            [xp[:, :, k:k + l_out] for k in range(k_taps)], axis=1)  # (N, K*C, l_out)
    w2b = jnp.broadcast_to(w2[None, :, :], (n, f, d))
    h = lax.dot_general(
        w2b, cols,
        dimension_numbers=(((2,), (1,)), ((0,), (0,))),
        preferred_element_type=jnp.float32)                         # (N, F, l_out)
    return h + b


def _bn_act(h, gamma, beta, *, relu):
    """Training-mode BatchNorm1d folded into one per-channel FMA (+ReLU).

    h: (N, F, L); gamma/beta: (1, F, 1). Stats over (N, L), biased variance.
    """
    n, _, l = h.shape
    inv_cnt = 1.0 / float(n * l)
    s1 = jnp.sum(jnp.sum(h, axis=2, keepdims=True), axis=0, keepdims=True)
    s2 = jnp.sum(jnp.sum(h * h, axis=2, keepdims=True), axis=0, keepdims=True)
    mean = s1 * inv_cnt
    var = jnp.maximum(s2 * inv_cnt - mean * mean, 0.0)              # f32, clamped
    scale = gamma * lax.rsqrt(var + EPS)                            # (1, F, 1)
    shift = beta - mean * scale                                     # (1, F, 1)
    y = h * scale + shift
    if relu:
        y = jnp.maximum(y, 0.0)
    return y


# ------------------------------- kernel ------------------------------------

def ts_resnet_block_kernel(xpad_ref, w1_ref, w2_ref, w3_ref, wsc_ref, pp_ref,
                           out_ref, buf_ref):
    n, _, lp = xpad_ref.shape
    l = lp - 8                              # conv1 padding = 4 on each side
    f = out_ref.shape[1]
    l_out = l + 2

    pp = pp_ref[...]                        # (F, 12) packed per-channel params

    def col(j):                             # (F, 1) column -> broadcastable (1, F, 1)
        return pp[:, j:j + 1][None, :, :]

    xp = xpad_ref[...]                      # (N, Cin, L + 8)

    # Zero the pad=2 margins of the reusable intermediate buffer once.
    zeros2 = jnp.zeros((n, f, 2), dtype=jnp.float32)
    buf_ref[:, :, 0:2] = zeros2
    buf_ref[:, :, l + 2:l + 4] = zeros2

    # conv1 (k=9, pad=4) + bn1 + relu                       -> (N, F, L)
    h = _conv1d_im2col(xp, w1_ref[...], col(0), k_taps=9, l_out=l)
    h = _bn_act(h, col(1), col(2), relu=True)

    # conv2 (k=5, pad=2) + bn2 + relu                       -> (N, F, L)
    buf_ref[:, :, 2:2 + l] = h
    h = _conv1d_im2col(buf_ref[...], w2_ref[...], col(3), k_taps=5, l_out=l)
    h = _bn_act(h, col(4), col(5), relu=True)

    # conv3 (k=3, pad=2) + bn3 + relu                       -> (N, F, L + 2)
    buf_ref[:, :, 2:2 + l] = h
    h = _conv1d_im2col(buf_ref[...], w3_ref[...], col(6), k_taps=3, l_out=l_out)
    h = _bn_act(h, col(7), col(8), relu=True)

    # shortcut conv (k=1, pad=1) + bnsc                     -> (N, F, L + 2)
    sc = _conv1d_im2col(xp[:, :, 3:3 + l_out], wsc_ref[...], col(9),
                        k_taps=1, l_out=l_out)
    sc = _bn_act(sc, col(10), col(11), relu=False)

    out_ref[...] = jnp.maximum(sc + h, 0.0)


# ------------------------------ wrapper -------------------------------------

def ts_resnet_block(x_ncl, params):
    """x_ncl: (N, C_in, L) float32 -> (N, F, L + 2) float32 (PyTorch layout)."""
    n, _, l = x_ncl.shape
    f = params["w1"].shape[0]
    l_out = l + 2

    # Pre-pad once for conv1 (pad=4); the shortcut's pad=1 window is a slice
    # of the same padded tensor, so no extra padding pass is needed.
    xpad = jnp.pad(x_ncl.astype(jnp.float32), ((0, 0), (0, 0), (4, 4)))

    def w_im2col(w):                 # torch (F, C, K) -> (F, K*C), tap-major
        f_, c_, k_ = w.shape
        return jnp.transpose(w, (0, 2, 1)).reshape(f_, k_ * c_).astype(jnp.float32)

    # Pack all per-channel vectors into one (F, 12) array:
    # columns = [b1, g1, be1, b2, g2, be2, b3, g3, be3, bsc, gsc, besc]
    pp = jnp.stack(
        [params[k] for k in ("b1", "g1", "be1", "b2", "g2", "be2",
                             "b3", "g3", "be3", "bsc", "gsc", "besc")],
        axis=1).astype(jnp.float32)

    args = (
        xpad,
        w_im2col(params["w1"]), w_im2col(params["w2"]),
        w_im2col(params["w3"]), w_im2col(params["wsc"]),
        pp,
    )

    vmem = pl.BlockSpec(memory_space=pltpu.MemorySpace.VMEM)
    return pl.pallas_call(
        ts_resnet_block_kernel,
        out_shape=jax.ShapeDtypeStruct((n, f, l_out), jnp.float32),
        in_specs=[vmem] * len(args),
        out_specs=vmem,
        scratch_shapes=[pltpu.VMEM((n, f, l + 4), jnp.float32)],
        compiler_params=pltpu.CompilerParams(vmem_limit_bytes=32 * 1024 * 1024),
    )(*args)


# --------------------------- pure-JAX reference ------------------------------

def reference(x, params):
    def conv(h, w, b, pad):
        y = lax.conv_general_dilated(
            h, w, window_strides=(1,), padding=[(pad, pad)],
            dimension_numbers=("NCH", "OIH", "NCH"))
        return y + b[None, :, None]

    def bn(h, g, be):
        mean = jnp.mean(h, axis=(0, 2), keepdims=True)
        var = jnp.mean((h - mean) ** 2, axis=(0, 2), keepdims=True)
        return (h - mean) * lax.rsqrt(var + EPS) * g[None, :, None] + be[None, :, None]

    relu = lambda z: jnp.maximum(z, 0.0)
    h = relu(bn(conv(x, params["w1"], params["b1"], 4), params["g1"], params["be1"]))
    h = relu(bn(conv(h, params["w2"], params["b2"], 2), params["g2"], params["be2"]))
    h = relu(bn(conv(h, params["w3"], params["b3"], 2), params["g3"], params["be3"]))
    sc = bn(conv(x, params["wsc"], params["bsc"], 1), params["gsc"], params["besc"])
    return relu(sc + h)


# --------------------------------- main --------------------------------------

if __name__ == "__main__":
    N, Cin, L, F = 2, 4, 16, 8     # small synthetic shapes

    ks = jax.random.split(jax.random.PRNGKey(0), 17)

    def nrm(k, shape, scale=0.1):
        return scale * jax.random.normal(k, shape, dtype=jnp.float32)

    params = {
        "w1": nrm(ks[0], (F, Cin, 9)), "b1": nrm(ks[1], (F,)),
        "g1": 1.0 + nrm(ks[2], (F,)), "be1": nrm(ks[3], (F,)),
        "w2": nrm(ks[4], (F, F, 5)),  "b2": nrm(ks[5], (F,)),
        "g2": 1.0 + nrm(ks[6], (F,)), "be2": nrm(ks[7], (F,)),
        "w3": nrm(ks[8], (F, F, 3)),  "b3": nrm(ks[9], (F,)),
        "g3": 1.0 + nrm(ks[10], (F,)), "be3": nrm(ks[11], (F,)),
        "wsc": nrm(ks[12], (F, Cin, 1)), "bsc": nrm(ks[13], (F,)),
        "gsc": 1.0 + nrm(ks[14], (F,)), "besc": nrm(ks[15], (F,)),
    }

    x = jax.random.normal(ks[16], (N, Cin, L), dtype=jnp.float32)

    out = jax.block_until_ready(ts_resnet_block(x, params))
    ref = jax.block_until_ready(reference(x, params))

    assert out.shape == (N, F, L + 2), out.shape
    if not jnp.allclose(out, ref, atol=2e-2, rtol=2e-2):
        raise AssertionError(
            "mismatch, max abs diff = %f" % float(jnp.max(jnp.abs(out - ref))))

    print("KERNEL_OK")
</pallas_src>

<mosaic_0001>
module attributes {stable_mosaic.version = 11 : i64} {
  func.func @ts_resnet_block_kernel(%arg0: memref<2x4x24xf32, #tpu.memory_space<vmem>>, %arg1: memref<8x36xf32, #tpu.memory_space<vmem>>, %arg2: memref<8x40xf32, #tpu.memory_space<vmem>>, %arg3: memref<8x24xf32, #tpu.memory_space<vmem>>, %arg4: memref<8x4xf32, #tpu.memory_space<vmem>>, %arg5: memref<8x12xf32, #tpu.memory_space<vmem>>, %arg6: memref<2x8x18xf32, #tpu.memory_space<vmem>>, %arg7: memref<2x8x20xf32, #tpu.memory_space<vmem>>) attributes {dimension_semantics = [], scalar_prefetch = 0 : i64, scratch_operands = 1 : i64, tpu.core_type = #tpu.core_type<tc>} {
    %c0 = arith.constant 0 : index
    %c0_0 = arith.constant 0 : index
    %0 = vector.load %arg5[%c0, %c0_0] : memref<8x12xf32, #tpu.memory_space<vmem>>, vector<8x12xf32>
    %c0_1 = arith.constant 0 : index
    %c0_2 = arith.constant 0 : index
    %c0_3 = arith.constant 0 : index
    %1 = vector.load %arg0[%c0_1, %c0_2, %c0_3] : memref<2x4x24xf32, #tpu.memory_space<vmem>>, vector<2x4x24xf32>
    %cst = arith.constant 0.000000e+00 : f32
    %2 = vector.broadcast %cst : f32 to vector<2x8x2xf32>
    %c0_4 = arith.constant 0 : index
    %c0_5 = arith.constant 0 : index
    %c0_6 = arith.constant 0 : index
    %3 = vector.load %arg7[%c0_4, %c0_5, %c0_6] : memref<2x8x20xf32, #tpu.memory_space<vmem>>, vector<2x8x2xf32>
    tpu.vector_store %arg7[%c0_4, %c0_5, %c0_6], %2 {strides = array<i32>} : memref<2x8x20xf32, #tpu.memory_space<vmem>>, vector<2x8x2xf32>,
    %c0_7 = arith.constant 0 : index
    %c0_8 = arith.constant 0 : index
    %c18 = arith.constant 18 : index
    %4 = vector.load %arg7[%c0_7, %c0_8, %c18] : memref<2x8x20xf32, #tpu.memory_space<vmem>>, vector<2x8x2xf32>
    tpu.vector_store %arg7[%c0_7, %c0_8, %c18], %2 {strides = array<i32>} : memref<2x8x20xf32, #tpu.memory_space<vmem>>, vector<2x8x2xf32>,
    %c0_9 = arith.constant 0 : index
    %c0_10 = arith.constant 0 : index
    %5 = vector.load %arg1[%c0_9, %c0_10] : memref<8x36xf32, #tpu.memory_space<vmem>>, vector<8x36xf32>
    %6 = vector.extract_strided_slice %0 {offsets = [0, 0], sizes = [8, 1], strides = [1, 1]} : vector<8x12xf32> to vector<8x1xf32>
    %7 = vector.shape_cast %6 : vector<8x1xf32> to vector<1x8x1xf32>
    %8 = vector.extract_strided_slice %1 {offsets = [0, 0, 0], sizes = [2, 4, 16], strides = [1, 1, 1]} : vector<2x4x24xf32> to vector<2x4x16xf32>
    %9 = vector.extract_strided_slice %1 {offsets = [0, 0, 1], sizes = [2, 4, 16], strides = [1, 1, 1]} : vector<2x4x24xf32> to vector<2x4x16xf32>
    %10 = vector.extract_strided_slice %1 {offsets = [0, 0, 2], sizes = [2, 4, 16], strides = [1, 1, 1]} : vector<2x4x24xf32> to vector<2x4x16xf32>
    %11 = vector.extract_strided_slice %1 {offsets = [0, 0, 3], sizes = [2, 4, 16], strides = [1, 1, 1]} : vector<2x4x24xf32> to vector<2x4x16xf32>
    %12 = vector.extract_strided_slice %1 {offsets = [0, 0, 4], sizes = [2, 4, 16], strides = [1, 1, 1]} : vector<2x4x24xf32> to vector<2x4x16xf32>
    %13 = vector.extract_strided_slice %1 {offsets = [0, 0, 5], sizes = [2, 4, 16], strides = [1, 1, 1]} : vector<2x4x24xf32> to vector<2x4x16xf32>
    %14 = vector.extract_strided_slice %1 {offsets = [0, 0, 6], sizes = [2, 4, 16], strides = [1, 1, 1]} : vector<2x4x24xf32> to vector<2x4x16xf32>
    %15 = vector.extract_strided_slice %1 {offsets = [0, 0, 7], sizes = [2, 4, 16], strides = [1, 1, 1]} : vector<2x4x24xf32> to vector<2x4x16xf32>
    %16 = vector.extract_strided_slice %1 {offsets = [0, 0, 8], sizes = [2, 4, 16], strides = [1, 1, 1]} : vector<2x4x24xf32> to vector<2x4x16xf32>
    %17 = tpu.concatenate %8, %9, %10, %11, %12, %13, %14, %15, %16 in 1 : vector<2x4x16xf32>, vector<2x4x16xf32>, vector<2x4x16xf32>, vector<2x4x16xf32>, vector<2x4x16xf32>, vector<2x4x16xf32>, vector<2x4x16xf32>, vector<2x4x16xf32>, vector<2x4x16xf32> -> vector<2x36x16xf32>
    %18 = vector.shape_cast %5 : vector<8x36xf32> to vector<1x8x36xf32>
    %19 = vector.shape_cast %18 : vector<1x8x36xf32> to vector<1x8x36xf32>
    %20 = vector.broadcast %19 : vector<1x8x36xf32> to vector<2x8x36xf32>
    %cst_11 = arith.constant dense<0.000000e+00> : vector<2x8x16xf32>
    %21 = tpu.matmul %20, %17, %cst_11 {dimension_numbers = #tpu.dot_dimension_numbers<[2], [1], [1], [2], [0, 0, 0, 1, 1, 2], [0], [0]>} : vector<2x8x36xf32>, vector<2x36x16xf32>, vector<2x8x16xf32> -> vector<2x8x16xf32>
    %22 = vector.broadcast %7 : vector<1x8x1xf32> to vector<2x8x16xf32>
    %23 = arith.addf %21, %22 : vector<2x8x16xf32>
    %24 = vector.extract_strided_slice %0 {offsets = [0, 1], sizes = [8, 1], strides = [1, 1]} : vector<8x12xf32> to vector<8x1xf32>
    %25 = vector.shape_cast %24 : vector<8x1xf32> to vector<1x8x1xf32>
    %26 = vector.extract_strided_slice %0 {offsets = [0, 2], sizes = [8, 1], strides = [1, 1]} : vector<8x12xf32> to vector<8x1xf32>
    %27 = vector.shape_cast %26 : vector<8x1xf32> to vector<1x8x1xf32>
    %cst_12 = arith.constant dense<0.000000e+00> : vector<2x8xf32>
    %28 = vector.multi_reduction <add>, %23, %cst_12 [2] : vector<2x8x16xf32> to vector<2x8xf32>
    %29 = vector.shape_cast %28 : vector<2x8xf32> to vector<2x8x1xf32>
    %cst_13 = arith.constant dense<0.000000e+00> : vector<8x1xf32>
    %30 = vector.multi_reduction <add>, %29, %cst_13 [0] : vector<2x8x1xf32> to vector<8x1xf32>
    %31 = vector.shape_cast %30 : vector<8x1xf32> to vector<1x8x1xf32>
    %32 = arith.mulf %23, %23 : vector<2x8x16xf32>
    %cst_14 = arith.constant dense<0.000000e+00> : vector<2x8xf32>
    %33 = vector.multi_reduction <add>, %32, %cst_14 [2] : vector<2x8x16xf32> to vector<2x8xf32>
    %34 = vector.shape_cast %33 : vector<2x8xf32> to vector<2x8x1xf32>
    %cst_15 = arith.constant dense<0.000000e+00> : vector<8x1xf32>
    %35 = vector.multi_reduction <add>, %34, %cst_15 [0] : vector<2x8x1xf32> to vector<8x1xf32>
    %36 = vector.shape_cast %35 : vector<8x1xf32> to vector<1x8x1xf32>
    %cst_16 = arith.constant 3.125000e-02 : f32
    %37 = vector.broadcast %cst_16 : f32 to vector<1x8x1xf32>
    %38 = arith.mulf %31, %37 : vector<1x8x1xf32>
    %cst_17 = arith.constant 3.125000e-02 : f32
    %39 = vector.broadcast %cst_17 : f32 to vector<1x8x1xf32>
    %40 = arith.mulf %36, %39 : vector<1x8x1xf32>
    %41 = arith.mulf %38, %38 : vector<1x8x1xf32>
    %42 = arith.subf %40, %41 : vector<1x8x1xf32>
    %cst_18 = arith.constant 0.000000e+00 : f32
    %43 = vector.broadcast %cst_18 : f32 to vector<1x8x1xf32>
    %44 = arith.maximumf %42, %43 : vector<1x8x1xf32>
    %cst_19 = arith.constant 9.99999974E-6 : f32
    %45 = vector.broadcast %cst_19 : f32 to vector<1x8x1xf32>
    %46 = arith.addf %44, %45 : vector<1x8x1xf32>
    %47 = math.rsqrt %46 : vector<1x8x1xf32>
    %48 = arith.mulf %25, %47 : vector<1x8x1xf32>
    %49 = arith.mulf %38, %48 : vector<1x8x1xf32>
    %50 = arith.subf %27, %49 : vector<1x8x1xf32>
    %51 = vector.broadcast %48 : vector<1x8x1xf32> to vector<2x8x16xf32>
    %52 = arith.mulf %23, %51 : vector<2x8x16xf32>
    %53 = vector.broadcast %50 : vector<1x8x1xf32> to vector<2x8x16xf32>
    %54 = arith.addf %52, %53 : vector<2x8x16xf32>
    %cst_20 = arith.constant 0.000000e+00 : f32
    %55 = vector.broadcast %cst_20 : f32 to vector<2x8x16xf32>
    %56 = arith.maximumf %54, %55 : vector<2x8x16xf32>
    %c0_21 = arith.constant 0 : index
    %c0_22 = arith.constant 0 : index
    %c2 = arith.constant 2 : index
    %57 = vector.load %arg7[%c0_21, %c0_22, %c2] : memref<2x8x20xf32, #tpu.memory_space<vmem>>, vector<2x8x16xf32>
    tpu.vector_store %arg7[%c0_21, %c0_22, %c2], %56 {strides = array<i32>} : memref<2x8x20xf32, #tpu.memory_space<vmem>>, vector<2x8x16xf32>,
    %c0_23 = arith.constant 0 : index
    %c0_24 = arith.constant 0 : index
    %c0_25 = arith.constant 0 : index
    %58 = vector.load %arg7[%c0_23, %c0_24, %c0_25] : memref<2x8x20xf32, #tpu.memory_space<vmem>>, vector<2x8x20xf32>
    %c0_26 = arith.constant 0 : index
    %c0_27 = arith.constant 0 : index
    %59 = vector.load %arg2[%c0_26, %c0_27] : memref<8x40xf32, #tpu.memory_space<vmem>>, vector<8x40xf32>
    %60 = vector.extract_strided_slice %0 {offsets = [0, 3], sizes = [8, 1], strides = [1, 1]} : vector<8x12xf32> to vector<8x1xf32>
    %61 = vector.shape_cast %60 : vector<8x1xf32> to vector<1x8x1xf32>
    %62 = vector.extract_strided_slice %58 {offsets = [0, 0, 0], sizes = [2, 8, 16], strides = [1, 1, 1]} : vector<2x8x20xf32> to vector<2x8x16xf32>
    %63 = vector.extract_strided_slice %58 {offsets = [0, 0, 1], sizes = [2, 8, 16], strides = [1, 1, 1]} : vector<2x8x20xf32> to vector<2x8x16xf32>
    %64 = vector.extract_strided_slice %58 {offsets = [0, 0, 2], sizes = [2, 8, 16], strides = [1, 1, 1]} : vector<2x8x20xf32> to vector<2x8x16xf32>
    %65 = vector.extract_strided_slice %58 {offsets = [0, 0, 3], sizes = [2, 8, 16], strides = [1, 1, 1]} : vector<2x8x20xf32> to vector<2x8x16xf32>
    %66 = vector.extract_strided_slice %58 {offsets = [0, 0, 4], sizes = [2, 8, 16], strides = [1, 1, 1]} : vector<2x8x20xf32> to vector<2x8x16xf32>
    %67 = tpu.concatenate %62, %63, %64, %65, %66 in 1 : vector<2x8x16xf32>, vector<2x8x16xf32>, vector<2x8x16xf32>, vector<2x8x16xf32>, vector<2x8x16xf32> -> vector<2x40x16xf32>
    %68 = vector.shape_cast %59 : vector<8x40xf32> to vector<1x8x40xf32>
    %69 = vector.shape_cast %68 : vector<1x8x40xf32> to vector<1x8x40xf32>
    %70 = vector.broadcast %69 : vector<1x8x40xf32> to vector<2x8x40xf32>
    %cst_28 = arith.constant dense<0.000000e+00> : vector<2x8x16xf32>
    %71 = tpu.matmul %70, %67, %cst_28 {dimension_numbers = #tpu.dot_dimension_numbers<[2], [1], [1], [2], [0, 0, 0, 1, 1, 2], [0], [0]>} : vector<2x8x40xf32>, vector<2x40x16xf32>, vector<2x8x16xf32> -> vector<2x8x16xf32>
    %72 = vector.broadcast %61 : vector<1x8x1xf32> to vector<2x8x16xf32>
    %73 = arith.addf %71, %72 : vector<2x8x16xf32>
    %74 = vector.extract_strided_slice %0 {offsets = [0, 4], sizes = [8, 1], strides = [1, 1]} : vector<8x12xf32> to vector<8x1xf32>
    %75 = vector.shape_cast %74 : vector<8x1xf32> to vector<1x8x1xf32>
    %76 = vector.extract_strided_slice %0 {offsets = [0, 5], sizes = [8, 1], strides = [1, 1]} : vector<8x12xf32> to vector<8x1xf32>
    %77 = vector.shape_cast %76 : vector<8x1xf32> to vector<1x8x1xf32>
    %cst_29 = arith.constant dense<0.000000e+00> : vector<2x8xf32>
    %78 = vector.multi_reduction <add>, %73, %cst_29 [2] : vector<2x8x16xf32> to vector<2x8xf32>
    %79 = vector.shape_cast %78 : vector<2x8xf32> to vector<2x8x1xf32>
    %cst_30 = arith.constant dense<0.000000e+00> : vector<8x1xf32>
    %80 = vector.multi_reduction <add>, %79, %cst_30 [0] : vector<2x8x1xf32> to vector<8x1xf32>
    %81 = vector.shape_cast %80 : vector<8x1xf32> to vector<1x8x1xf32>
    %82 = arith.mulf %73, %73 : vector<2x8x16xf32>
    %cst_31 = arith.constant dense<0.000000e+00> : vector<2x8xf32>
    %83 = vector.multi_reduction <add>, %82, %cst_31 [2] : vector<2x8x16xf32> to vector<2x8xf32>
    %84 = vector.shape_cast %83 : vector<2x8xf32> to vector<2x8x1xf32>
    %cst_32 = arith.constant dense<0.000000e+00> : vector<8x1xf32>
    %85 = vector.multi_reduction <add>, %84, %cst_32 [0] : vector<2x8x1xf32> to vector<8x1xf32>
    %86 = vector.shape_cast %85 : vector<8x1xf32> to vector<1x8x1xf32>
    %cst_33 = arith.constant 3.125000e-02 : f32
    %87 = vector.broadcast %cst_33 : f32 to vector<1x8x1xf32>
    %88 = arith.mulf %81, %87 : vector<1x8x1xf32>
    %cst_34 = arith.constant 3.125000e-02 : f32
    %89 = vector.broadcast %cst_34 : f32 to vector<1x8x1xf32>
    %90 = arith.mulf %86, %89 : vector<1x8x1xf32>
    %91 = arith.mulf %88, %88 : vector<1x8x1xf32>
    %92 = arith.subf %90, %91 : vector<1x8x1xf32>
    %cst_35 = arith.constant 0.000000e+00 : f32
    %93 = vector.broadcast %cst_35 : f32 to vector<1x8x1xf32>
    %94 = arith.maximumf %92, %93 : vector<1x8x1xf32>
    %cst_36 = arith.constant 9.99999974E-6 : f32
    %95 = vector.broadcast %cst_36 : f32 to vector<1x8x1xf32>
    %96 = arith.addf %94, %95 : vector<1x8x1xf32>
    %97 = math.rsqrt %96 : vector<1x8x1xf32>
    %98 = arith.mulf %75, %97 : vector<1x8x1xf32>
    %99 = arith.mulf %88, %98 : vector<1x8x1xf32>
    %100 = arith.subf %77, %99 : vector<1x8x1xf32>
    %101 = vector.broadcast %98 : vector<1x8x1xf32> to vector<2x8x16xf32>
    %102 = arith.mulf %73, %101 : vector<2x8x16xf32>
    %103 = vector.broadcast %100 : vector<1x8x1xf32> to vector<2x8x16xf32>
    %104 = arith.addf %102, %103 : vector<2x8x16xf32>
    %cst_37 = arith.constant 0.000000e+00 : f32
    %105 = vector.broadcast %cst_37 : f32 to vector<2x8x16xf32>
    %106 = arith.maximumf %104, %105 : vector<2x8x16xf32>
    %c0_38 = arith.constant 0 : index
    %c0_39 = arith.constant 0 : index
    %c2_40 = arith.constant 2 : index
    %107 = vector.load %arg7[%c0_38, %c0_39, %c2_40] : memref<2x8x20xf32, #tpu.memory_space<vmem>>, vector<2x8x16xf32>
    tpu.vector_store %arg7[%c0_38, %c0_39, %c2_40], %106 {strides = array<i32>} : memref<2x8x20xf32, #tpu.memory_space<vmem>>, vector<2x8x16xf32>,
    %c0_41 = arith.constant 0 : index
    %c0_42 = arith.constant 0 : index
    %c0_43 = arith.constant 0 : index
    %108 = vector.load %arg7[%c0_41, %c0_42, %c0_43] : memref<2x8x20xf32, #tpu.memory_space<vmem>>, vector<2x8x20xf32>
    %c0_44 = arith.constant 0 : index
    %c0_45 = arith.constant 0 : index
    %109 = vector.load %arg3[%c0_44, %c0_45] : memref<8x24xf32, #tpu.memory_space<vmem>>, vector<8x24xf32>
    %110 = vector.extract_strided_slice %0 {offsets = [0, 6], sizes = [8, 1], strides = [1, 1]} : vector<8x12xf32> to vector<8x1xf32>
    %111 = vector.shape_cast %110 : vector<8x1xf32> to vector<1x8x1xf32>
    %112 = vector.extract_strided_slice %108 {offsets = [0, 0, 0], sizes = [2, 8, 18], strides = [1, 1, 1]} : vector<2x8x20xf32> to vector<2x8x18xf32>
    %113 = vector.extract_strided_slice %108 {offsets = [0, 0, 1], sizes = [2, 8, 18], strides = [1, 1, 1]} : vector<2x8x20xf32> to vector<2x8x18xf32>
    %114 = vector.extract_strided_slice %108 {offsets = [0, 0, 2], sizes = [2, 8, 18], strides = [1, 1, 1]} : vector<2x8x20xf32> to vector<2x8x18xf32>
    %115 = tpu.concatenate %112, %113, %114 in 1 : vector<2x8x18xf32>, vector<2x8x18xf32>, vector<2x8x18xf32> -> vector<2x24x18xf32>
    %116 = vector.shape_cast %109 : vector<8x24xf32> to vector<1x8x24xf32>
    %117 = vector.shape_cast %116 : vector<1x8x24xf32> to vector<1x8x24xf32>
    %118 = vector.broadcast %117 : vector<1x8x24xf32> to vector<2x8x24xf32>
    %cst_46 = arith.constant dense<0.000000e+00> : vector<2x8x18xf32>
    %119 = tpu.matmul %118, %115, %cst_46 {dimension_numbers = #tpu.dot_dimension_numbers<[2], [1], [1], [2], [0, 0, 0, 1, 1, 2], [0], [0]>} : vector<2x8x24xf32>, vector<2x24x18xf32>, vector<2x8x18xf32> -> vector<2x8x18xf32>
    %120 = vector.broadcast %111 : vector<1x8x1xf32> to vector<2x8x18xf32>
    %121 = arith.addf %119, %120 : vector<2x8x18xf32>
    %122 = vector.extract_strided_slice %0 {offsets = [0, 7], sizes = [8, 1], strides = [1, 1]} : vector<8x12xf32> to vector<8x1xf32>
    %123 = vector.shape_cast %122 : vector<8x1xf32> to vector<1x8x1xf32>
    %124 = vector.extract_strided_slice %0 {offsets = [0, 8], sizes = [8, 1], strides = [1, 1]} : vector<8x12xf32> to vector<8x1xf32>
    %125 = vector.shape_cast %124 : vector<8x1xf32> to vector<1x8x1xf32>
    %cst_47 = arith.constant dense<0.000000e+00> : vector<2x8xf32>
    %126 = vector.multi_reduction <add>, %121, %cst_47 [2] : vector<2x8x18xf32> to vector<2x8xf32>
    %127 = vector.shape_cast %126 : vector<2x8xf32> to vector<2x8x1xf32>
    %cst_48 = arith.constant dense<0.000000e+00> : vector<8x1xf32>
    %128 = vector.multi_reduction <add>, %127, %cst_48 [0] : vector<2x8x1xf32> to vector<8x1xf32>
    %129 = vector.shape_cast %128 : vector<8x1xf32> to vector<1x8x1xf32>
    %130 = arith.mulf %121, %121 : vector<2x8x18xf32>
    %cst_49 = arith.constant dense<0.000000e+00> : vector<2x8xf32>
    %131 = vector.multi_reduction <add>, %130, %cst_49 [2] : vector<2x8x18xf32> to vector<2x8xf32>
    %132 = vector.shape_cast %131 : vector<2x8xf32> to vector<2x8x1xf32>
    %cst_50 = arith.constant dense<0.000000e+00> : vector<8x1xf32>
    %133 = vector.multi_reduction <add>, %132, %cst_50 [0] : vector<2x8x1xf32> to vector<8x1xf32>
    %134 = vector.shape_cast %133 : vector<8x1xf32> to vector<1x8x1xf32>
    %cst_51 = arith.constant 0.027777778 : f32
    %135 = vector.broadcast %cst_51 : f32 to vector<1x8x1xf32>
    %136 = arith.mulf %129, %135 : vector<1x8x1xf32>
    %cst_52 = arith.constant 0.027777778 : f32
    %137 = vector.broadcast %cst_52 : f32 to vector<1x8x1xf32>
    %138 = arith.mulf %134, %137 : vector<1x8x1xf32>
    %139 = arith.mulf %136, %136 : vector<1x8x1xf32>
    %140 = arith.subf %138, %139 : vector<1x8x1xf32>
    %cst_53 = arith.constant 0.000000e+00 : f32
    %141 = vector.broadcast %cst_53 : f32 to vector<1x8x1xf32>
    %142 = arith.maximumf %140, %141 : vector<1x8x1xf32>
    %cst_54 = arith.constant 9.99999974E-6 : f32
    %143 = vector.broadcast %cst_54 : f32 to vector<1x8x1xf32>
    %144 = arith.addf %142, %143 : vector<1x8x1xf32>
    %145 = math.rsqrt %144 : vector<1x8x1xf32>
    %146 = arith.mulf %123, %145 : vector<1x8x1xf32>
    %147 = arith.mulf %136, %146 : vector<1x8x1xf32>
    %148 = arith.subf %125, %147 : vector<1x8x1xf32>
    %149 = vector.broadcast %146 : vector<1x8x1xf32> to vector<2x8x18xf32>
    %150 = arith.mulf %121, %149 : vector<2x8x18xf32>
    %151 = vector.broadcast %148 : vector<1x8x1xf32> to vector<2x8x18xf32>
    %152 = arith.addf %150, %151 : vector<2x8x18xf32>
    %cst_55 = arith.constant 0.000000e+00 : f32
    %153 = vector.broadcast %cst_55 : f32 to vector<2x8x18xf32>
    %154 = arith.maximumf %152, %153 : vector<2x8x18xf32>
    %155 = vector.extract_strided_slice %1 {offsets = [0, 0, 3], sizes = [2, 4, 18], strides = [1, 1, 1]} : vector<2x4x24xf32> to vector<2x4x18xf32>
    %c0_56 = arith.constant 0 : index
    %c0_57 = arith.constant 0 : index
    %156 = vector.load %arg4[%c0_56, %c0_57] : memref<8x4xf32, #tpu.memory_space<vmem>>, vector<8x4xf32>
    %157 = vector.extract_strided_slice %0 {offsets = [0, 9], sizes = [8, 1], strides = [1, 1]} : vector<8x12xf32> to vector<8x1xf32>
    %158 = vector.shape_cast %157 : vector<8x1xf32> to vector<1x8x1xf32>
    %159 = vector.shape_cast %156 : vector<8x4xf32> to vector<1x8x4xf32>
    %160 = vector.shape_cast %159 : vector<1x8x4xf32> to vector<1x8x4xf32>
    %161 = vector.broadcast %160 : vector<1x8x4xf32> to vector<2x8x4xf32>
    %cst_58 = arith.constant dense<0.000000e+00> : vector<2x8x18xf32>
    %162 = tpu.matmul %161, %155, %cst_58 {dimension_numbers = #tpu.dot_dimension_numbers<[2], [1], [1], [2], [0, 0, 0, 1, 1, 2], [0], [0]>} : vector<2x8x4xf32>, vector<2x4x18xf32>, vector<2x8x18xf32> -> vector<2x8x18xf32>
    %163 = vector.broadcast %158 : vector<1x8x1xf32> to vector<2x8x18xf32>
    %164 = arith.addf %162, %163 : vector<2x8x18xf32>
    %165 = vector.extract_strided_slice %0 {offsets = [0, 10], sizes = [8, 1], strides = [1, 1]} : vector<8x12xf32> to vector<8x1xf32>
    %166 = vector.shape_cast %165 : vector<8x1xf32> to vector<1x8x1xf32>
    %167 = vector.extract_strided_slice %0 {offsets = [0, 11], sizes = [8, 1], strides = [1, 1]} : vector<8x12xf32> to vector<8x1xf32>
    %168 = vector.shape_cast %167 : vector<8x1xf32> to vector<1x8x1xf32>
    %cst_59 = arith.constant dense<0.000000e+00> : vector<2x8xf32>
    %169 = vector.multi_reduction <add>, %164, %cst_59 [2] : vector<2x8x18xf32> to vector<2x8xf32>
    %170 = vector.shape_cast %169 : vector<2x8xf32> to vector<2x8x1xf32>
    %cst_60 = arith.constant dense<0.000000e+00> : vector<8x1xf32>
    %171 = vector.multi_reduction <add>, %170, %cst_60 [0] : vector<2x8x1xf32> to vector<8x1xf32>
    %172 = vector.shape_cast %171 : vector<8x1xf32> to vector<1x8x1xf32>
    %173 = arith.mulf %164, %164 : vector<2x8x18xf32>
    %cst_61 = arith.constant dense<0.000000e+00> : vector<2x8xf32>
    %174 = vector.multi_reduction <add>, %173, %cst_61 [2] : vector<2x8x18xf32> to vector<2x8xf32>
    %175 = vector.shape_cast %174 : vector<2x8xf32> to vector<2x8x1xf32>
    %cst_62 = arith.constant dense<0.000000e+00> : vector<8x1xf32>
    %176 = vector.multi_reduction <add>, %175, %cst_62 [0] : vector<2x8x1xf32> to vector<8x1xf32>
    %177 = vector.shape_cast %176 : vector<8x1xf32> to vector<1x8x1xf32>
    %cst_63 = arith.constant 0.027777778 : f32
    %178 = vector.broadcast %cst_63 : f32 to vector<1x8x1xf32>
    %179 = arith.mulf %172, %178 : vector<1x8x1xf32>
    %cst_64 = arith.constant 0.027777778 : f32
    %180 = vector.broadcast %cst_64 : f32 to vector<1x8x1xf32>
    %181 = arith.mulf %177, %180 : vector<1x8x1xf32>
    %182 = arith.mulf %179, %179 : vector<1x8x1xf32>
    %183 = arith.subf %181, %182 : vector<1x8x1xf32>
    %cst_65 = arith.constant 0.000000e+00 : f32
    %184 = vector.broadcast %cst_65 : f32 to vector<1x8x1xf32>
    %185 = arith.maximumf %183, %184 : vector<1x8x1xf32>
    %cst_66 = arith.constant 9.99999974E-6 : f32
    %186 = vector.broadcast %cst_66 : f32 to vector<1x8x1xf32>
    %187 = arith.addf %185, %186 : vector<1x8x1xf32>
    %188 = math.rsqrt %187 : vector<1x8x1xf32>
    %189 = arith.mulf %166, %188 : vector<1x8x1xf32>
    %190 = arith.mulf %179, %189 : vector<1x8x1xf32>
    %191 = arith.subf %168, %190 : vector<1x8x1xf32>
    %192 = vector.broadcast %189 : vector<1x8x1xf32> to vector<2x8x18xf32>
    %193 = arith.mulf %164, %192 : vector<2x8x18xf32>
    %194 = vector.broadcast %191 : vector<1x8x1xf32> to vector<2x8x18xf32>
    %195 = arith.addf %193, %194 : vector<2x8x18xf32>
    %196 = arith.addf %195, %154 : vector<2x8x18xf32>
    %cst_67 = arith.constant 0.000000e+00 : f32
    %197 = vector.broadcast %cst_67 : f32 to vector<2x8x18xf32>
    %198 = arith.maximumf %196, %197 : vector<2x8x18xf32>
    %c0_68 = arith.constant 0 : index
    %c0_69 = arith.constant 0 : index
    %c0_70 = arith.constant 0 : index
    %199 = vector.load %arg6[%c0_68, %c0_69, %c0_70] : memref<2x8x18xf32, #tpu.memory_space<vmem>>, vector<2x8x18xf32>
    tpu.vector_store %arg6[%c0_68, %c0_69, %c0_70], %198 {strides = array<i32>} : memref<2x8x18xf32, #tpu.memory_space<vmem>>, vector<2x8x18xf32>,
    return
  }
}

</mosaic_0001>

<bundles_post_ra>
// kernel: tpu_custom_call.1
= control target key start
LH: loop header
LB: loop body
LE: loop exit
PB: predicated region body
PF: predicated region fallthrough
CT: control target
= control target key end

     0   :  { %11 = vsyncpa [#allocation4], 0  ;;  %s1596_s0 = inlined_call_operand.vmem [shape: f32[2,4,24], index: 0, kind: input, shape index: {}]   ;;  %s1597_s1 = inlined_call_operand.hbm [shape: f32[8,36], index: 1, kind: input, shape index: {}]   ;;  %s1598_s2 = inlined_call_operand.vmem [shape: f32[8,40], index: 2, kind: input, shape index: {}]   ;;  %s1599_s3 = inlined_call_operand.hbm [shape: f32[8,24], index: 3, kind: input, shape index: {}]   ;;  %s1600_s4 = inlined_call_operand.vmem [shape: f32[8,4], index: 4, kind: input, shape index: {}]   ;;  %s1601_s5 = inlined_call_operand.vmem [shape: f32[8,12], index: 5, kind: input, shape index: {}]   ;;  %s1602_s6 = inlined_call_operand.hbm [shape: f32[2,8,18], index: 6, kind: output, shape index: {}]  }
   0x1   :  { %12 = vsyncpa [#allocation7], 0 }
   0x2   :  { %13 = vsyncpa [#allocation5], 0  ;;  %s1334_s21 = smov [#allocation3]   ;;  %s1335_s23 = smov [#allocation6]  }
   0x3   :  { %s22_s22 = sshll.u32 %s1334_s21, 4  ;;  %s34_s24 = sshll.u32 %s1335_s23, 4  ;;  %s23_s22 = int_to_ptr.vmem [resolvable:$true] %s22_s22  ;;  %s35_s24 = int_to_ptr.vmem [resolvable:$true] %s34_s24 }
   0x4   :  { %s1262_s27 = scalar_lea.hbm %s1597_s1, 128 }
   0x5   :  { %p1263_p0 = scmp.ne.s32.totalorder %s1597_s1, %s1262_s27  ;;  %p1266_p1 = scmp.lt.u32.totalorder %s1262_s27, %s1597_s1 }
   0x7   :  { %p1268_p2 = pnand %p1266_p1, %p1263_p0 }
   0x9   :  { %1271 = shalt.err (!%p1268_p2)
}
   0xa   :  { %s1272_s8 = scalar_lea.vmem %s23_s22, 128  ;;  %p1277_p4 = scmp.lt.s32.totalorder %s23_s22, %s23_s22 }
   0xb   :  { %p1273_p3 = scmp.ne.s32.totalorder %s23_s22, %s1272_s8  ;;  %p1278_p5 = scmp.lt.s32.totalorder %s1272_s8, %s1272_s8 }
   0xd   :  { %p1279_p6 = por %p1278_p5, %p1277_p4 }
   0xf   :  { %p1280_p7 = pnand %p1279_p6, %p1273_p3 }
  0x11   :  { %1283 = shalt.err (!%p1280_p7)
}
  0x12   :  { %25 = dma.hbm_to_vmem [thread:$0]  %s1597_s1, 128, %s23_s22, [#allocation4]  }
  0x13   :  { %s1284_s13 = scalar_lea.hbm %s1599_s3, 128 }
  0x14   :  { %p1285_p8 = scmp.ne.s32.totalorder %s1599_s3, %s1284_s13  ;;  %p1288_p9 = scmp.lt.u32.totalorder %s1284_s13, %s1599_s3 }
  0x16   :  { %p1290_p10 = pnand %p1288_p9, %p1285_p8 }
  0x18   :  { %1293 = shalt.err (!%p1290_p10)
}
  0x19   :  { %s1294_s18 = scalar_lea.vmem %s35_s24, 128  ;;  %p1299_p12 = scmp.lt.s32.totalorder %s35_s24, %s35_s24 }
  0x1a   :  { %p1295_p11 = scmp.ne.s32.totalorder %s35_s24, %s1294_s18  ;;  %p1300_p13 = scmp.lt.s32.totalorder %s1294_s18, %s1294_s18 }
  0x1c   :  { %p1301_p0 = por %p1300_p13, %p1299_p12 }
  0x1e   :  { %p1302_p1 = pnand %p1301_p0, %p1295_p11 }
  0x20   :  { %1305 = shalt.err (!%p1302_p1)
}
  0x21   :  { %37 = dma.hbm_to_vmem [thread:$0]  %s1599_s3, 128, %s35_s24, [#allocation7]  }
  0x22   :  { %1328 = dma.done.wait [#allocation4], 128  }
  0x23   :  { %1329 = vsyncadd [#allocation4], 4294967168 }
  0x24   :  { %1330 = dma.done.wait [#allocation7], 128  }
  0x25   :  { %1331 = vsyncadd [#allocation7], 4294967168  ;;  %v1336_v0 = vmov 0.0|0.0   ;;  %v1428_v1 = vld [vmem:[%s1596_s0] sm:$0xf]  ;;  %s1337_s3 = smov 124  }
  0x26   :  { %1126 = vmatprep.subr.bf16.mxu0 %v1336_v0  ;;  %1132 = vmatprep.subr.bf16.mxu1 %v1336_v0  ;;  %v1433_v2 = vld [vmem:[%s1596_s0 + $0x4] sm:$0xf]  ;;  %v60_v4 = vrot.slane %v1428_v1, 4  ;;  %s1338_s24 = smov 126   ;;  %s1339_s25 = smov 125   ;;  %vm1343_vm0 = vmmov 0  }
  0x27   :  { %v1191_v3 = vpack.i.bf16 %v1433_v2, %v1428_v1  ;;  %v61_v5 = vrot.slane %v1433_v2, 4  ;;  %s1340_s26 = smov 127   ;;  %s1341_s0 = smov 123   ;;  %v1344_v7 = vmov 0.0   ;;  %v1345_v8 = vmov 0   ;;  %v1451_v9 = vld [vmem:[%s1601_s5] sm:$0xff] }
  0x28   :  { %s1342_s27 = smov 122   ;;  %1056 = vmatprep.mubr.msk.f32.mxu0 %vm1343_vm0, %v1344_v7  ;;  %1069 = vmatprep.mubr.msk.f32.mxu1 %vm1343_vm0, %v1344_v7  ;;  %s1346_s28 = smov 121   ;;  %vm108_vm1 = vcmask 1043456   ;;  %v57_v45 = vld [vmem:[#allocation3] sm:$0xff]  ;;  %vm122_vm2 = vcmask 293888   ;;  %vm270_vm3 = vcmask 130048  }
  0x29   :  { %1192 = vrot.lane.b32.xlu1 %v1191_v3, %s1337_s3  ;;  %1187 = vrot.lane.b32.xlu0 %v1191_v3, %s1338_s24  ;;  %v1201_v6 = vpack.i.bf16 %v61_v5, %v60_v4  ;;  %s1347_s29 = smov 120   ;;  %v1348_v59 = vmov 1   ;;  %s1350_s5 = smov 1   ;;  %vm51_vm4 = vcmask 15360   ;;  %vm54_vm5 = vcmask 162960  }
  0x2a   :  { %1221 = vset.pattern.permute.xlu1 %v1345_v8  ;;  %1222 = vset.pattern.permute.xlu0 %v1348_v59  ;;  %52 = vst.msk [vmem:[#allocation2] sm:$0xff] %vm51_vm4, %v1344_v7  ;;  %53 = vst.msk [vmem:[#allocation2 + $0x8] sm:$0xff] %vm51_vm4, %v1344_v7  ;;  %s1351_s8 = smov 2   ;;  %vm325_vm6 = vcmask 146448   ;;  %vm361_vm7 = vcmask 326656   ;;  %vm582_vm8 = vcmask 195584  }
  0x2b   :  { %55 = vst.msk [vmem:[#allocation2] sm:$0xff] %vm54_vm5, %v1344_v7  ;;  %56 = vst.msk [vmem:[#allocation2 + $0x8] sm:$0xff] %vm54_vm5, %v1344_v7  ;;  %vm780_vm9 = vcmask 31744   ;;  %vm726_vm10 = vcmask 146432  }
  0x2d   :  { %1202 = vrot.lane.b32.xlu1 %v1201_v6, %s1339_s25  ;;  %1197 = vrot.lane.b32.xlu0 %v1201_v6, %s1340_s26 }
  0x31   :  { %1212 = vrot.lane.b32.xlu0 %v1201_v6, %s1341_s0  ;;  %1207 = vrot.lane.b32.xlu1 %v1191_v3, %s1342_s27 }
  0x35   :  { %1217 = vrot.lane.b32.xlu0 %v1201_v6, %s1346_s28  ;;  %104 = vrot.lane.b32.xlu1 %v1428_v1, %s1347_s29 }
  0x39   :  { %106 = vrot.lane.b32.xlu0 %v1433_v2, %s1347_s29  ;;  %119 = vperm.xlu1 %1221, %v1451_v9  }
  0x9b   :  { %v1193_v10 = vpop.permute.xlu1 %1192  ;;  %v1188_v11 = vpop.permute.xlu0 %1187 }
  0x9c   :  { %v1190_v12 = vunpack.i.h.bf16 %v1188_v11  ;;  %v1189_v13 = vunpack.i.l.bf16 %v1188_v11  ;;  %v1195_v33 = vunpack.i.h.bf16 %v1193_v10  ;;  %v1194_v34 = vunpack.i.l.bf16 %v1193_v10 }
  0x9f   :  { %v1203_v14 = vpop.permute.xlu1 %1202  ;;  %v1198_v15 = vpop.permute.xlu0 %1197 }
  0xa0   :  { %v1205_v16 = vunpack.i.h.bf16 %v1203_v14  ;;  %v1204_v17 = vunpack.i.l.bf16 %v1203_v14  ;;  %v1200_v18 = vunpack.i.h.bf16 %v1198_v15  ;;  %v1199_v19 = vunpack.i.l.bf16 %v1198_v15 }
  0xa2   :  { %v109_v20 = vsel %vm108_vm1, %v1428_v1, %v1199_v19  ;;  %v111_v21 = vsel %vm108_vm1, %v1189_v13, %v1204_v17  ;;  %v110_v22 = vsel %vm108_vm1, %v1433_v2, %v1200_v18  ;;  %v112_v23 = vsel %vm108_vm1, %v1190_v12, %v1205_v16 }
  0xa3   :  { %v1213_v24 = vpop.permute.xlu0 %1212  ;;  %v1127_v25 = vpack.c.bf16 %v111_v21, %v109_v20  ;;  %v1133_v26 = vpack.c.bf16 %v112_v23, %v110_v22  ;;  %v1208_v27 = vpop.permute.xlu1 %1207  ;;  %v1349_v13 = vmov 2  }
  0xa4   :  { %v1215_v28 = vunpack.i.h.bf16 %v1213_v24  ;;  %v1214_v29 = vunpack.i.l.bf16 %v1213_v24  ;;  %v1210_v30 = vunpack.i.h.bf16 %v1208_v27  ;;  %v1209_v31 = vunpack.i.l.bf16 %v1208_v27  ;;  %1223 = vset.pattern.permute.xlu1 %v1349_v13 }
  0xa5   :  { %1128 = vmatpush3.bf16.msra.mxu0 %v1127_v25  ;;  %1134 = vmatpush3.bf16.msra.mxu1 %v1133_v26 }
  0xa6   :  { %1129 = vmatprep.subr.bf16.mxu0 %v1336_v0  ;;  %1135 = vmatprep.subr.bf16.mxu1 %v1336_v0  ;;  %v113_v37 = vsel %vm108_vm1, %v1194_v34, %v1214_v29  ;;  %v114_v39 = vsel %vm108_vm1, %v1195_v33, %v1215_v28 }
  0xa7   :  { %v1218_v32 = vpop.permute.xlu0 %1217  ;;  %v105_v43 = vpop.permute.xlu1 %104 }
  0xa8   :  { %v1220_v35 = vunpack.i.h.bf16 %v1218_v32  ;;  %v1219_v36 = vunpack.i.l.bf16 %v1218_v32  ;;  %v1352_v32 = vmov 3  }
  0xaa   :  { %v115_v38 = vsel %vm108_vm1, %v1209_v31, %v1219_v36  ;;  %v116_v40 = vsel %vm108_vm1, %v1210_v30, %v1220_v35 }
  0xab   :  { %v1130_v41 = vpack.c.bf16 %v115_v38, %v113_v37  ;;  %v1136_v42 = vpack.c.bf16 %v116_v40, %v114_v39  ;;  %v107_v44 = vpop.permute.xlu0 %106 }
  0xad   :  { %1131 = vmatpush3.bf16.msra.mxu0 %v1130_v41  ;;  %1137 = vmatpush3.bf16.msra.mxu1 %v1136_v42 }
  0xae   :  { %1054 = vmatprep.subr.mxu0 %v1344_v7  ;;  %1067 = vmatprep.subr.mxu1 %v1344_v7 }
  0xb1   :  { %1055 = vmatpush3.msk.msra.mxu0 %vm108_vm1, %v105_v43  ;;  %1068 = vmatpush3.msk.msra.mxu1 %vm108_vm1, %v107_v44 }
  0xb2   :  { %1057 = vmatmul.mubr.msk.f32.vlgmr.msra.gmra.mrb[0].mxu0 %vm122_vm2, %v57_v45  ;;  %1070 = vmatmul.mubr.msk.f32.vlgmr.msra.gmra.mrb[0].mxu1 %vm122_vm2, %v57_v45 }
  0xb3   :  { %1138 = vmatprep.subr.bf16.mxu0 %v1336_v0  ;;  %1144 = vmatprep.subr.bf16.mxu1 %v1336_v0 }
  0xb4   :  { %1082 = vmatprep.mubr.msk.f32.mxu0 %vm1343_vm0, %v1344_v7  ;;  %1095 = vmatprep.mubr.msk.f32.mxu1 %vm1343_vm0, %v1344_v7 }
  0xb8   :  { %v120_v46 = vpop.permute.xlu1 %119 }
 0x185   :  { %v194_v47 = vpop.f32.mrb[0].mxu0  ;;  %v266_v48 = vpop.f32.mrb[0].mxu1 }
 0x186   :  { %v195_v49 = vadd.f32 %v194_v47, %v120_v46  ;;  %v267_v50 = vadd.f32 %v266_v48, %v120_v46  ;;  %v1058_v51 = vpop.f32.mrb[1].mxu0  ;;  %v1071_v52 = vpop.f32.mrb[1].mxu1  ;;  %v330_v47 = vld [vmem:[%s1598_s2] sm:$0xff] }
 0x188   :  { %v274_v53 = vsel %vm270_vm3, %v267_v50, 0.0  ;;  %v271_v54 = vsel %vm270_vm3, %v195_v49, 0.0  ;;  %v278_v55 = vmul.f32 %v195_v49, %v195_v49  ;;  %v279_v57 = vmul.f32 %v267_v50, %v267_v50 }
 0x189   :  { %275 = vadd.xlane.f32.xlu1 %v274_v53  ;;  %272 = vadd.xlane.f32.xlu0 %v271_v54 }
 0x18a   :  { %v280_v56 = vsel %vm270_vm3, %v278_v55, 0.0  ;;  %v283_v58 = vsel %vm270_vm3, %v279_v57, 0.0 }
 0x18d   :  { %281 = vadd.xlane.f32.xlu0 %v280_v56 }
 0x191   :  { %284 = vadd.xlane.f32.xlu0 %v283_v58 }
 0x216   :  { %v276_v60 = vpop.xlane.xlu1 %275  ;;  %v273_v61 = vpop.xlane.xlu0 %272 }
 0x217   :  { %v277_v62 = vadd.f32 %v276_v60, %v273_v61  ;;  %v1353_v61 = vmov 4  }
 0x219   :  { %v287_v3 = vmul.f32 0.03125, %v277_v62 }
 0x21a   :  { %v282_v63 = vpop.xlane.xlu0 %281 }
 0x21b   :  { %v289_v6 = vmul.f32 %v287_v3, %v287_v3 }
 0x21e   :  { %v285_v4 = vpop.xlane.xlu0 %284 }
 0x21f   :  { %v286_v5 = vadd.f32 %v285_v4, %v282_v63 }
 0x221   :  { %v288_v8 = vmul.f32 0.03125, %v286_v5 }
 0x223   :  { %v290_v10 = vsub.f32 %v288_v8, %v289_v6 }
 0x225   :  { %v291_v11 = vmax.f32 %v290_v10, 0.0 }
 0x227   :  { %v292_v12 = vadd.f32 1e-05, %v291_v11 }
 0x229   :  { %1254 = vrsqrt.f32 %v292_v12 }
 0x233   :  { %v1255_v14 = vpop.eup %1254 }
 0x234   :  { %v294_v15 = vmul.f32 %v1255_v14, %v1451_v9 }
 0x236   :  { %303 = vperm.xlu0 %1222, %v294_v15   ;;  %v295_v16 = vmul.f32 %v294_v15, %v287_v3  ;;  %v1354_v15 = vmov 5  }
 0x238   :  { %297 = vrot.lane.b32.xlu1 %v295_v16, %s1350_s5 }
 0x23a   :  { %1239 = vset.pattern.permute.xlu0 %v1352_v32 }
 0x23b   :  { %358 = vperm.xlu0 %1239, %v1451_v9  }
 0x23f   :  { %1240 = vset.pattern.permute.xlu0 %v1353_v61 }
 0x2aa   :  { %v298_v17 = vpop.permute.xlu1 %297 }
 0x2ab   :  { %v300_v18 = vsub.f32 %v1451_v9, %v298_v17 }
 0x2ad   :  { %310 = vperm.xlu1 %1223, %v300_v18  }
 0x2b1   :  { %1241 = vset.pattern.permute.xlu1 %v1354_v15 }
 0x2b5   :  { %v304_v19 = vpop.permute.xlu0 %303 }
 0x2b6   :  { %v306_v20 = vmul.f32 %v304_v19, %v195_v49  ;;  %v307_v22 = vmul.f32 %v304_v19, %v267_v50 }
 0x2ba   :  { %v359_v49 = vpop.permute.xlu0 %358 }
 0x32c   :  { %v311_v21 = vpop.permute.xlu1 %310 }
 0x32d   :  { %v313_v23 = vadd.f32 %v311_v21, %v306_v20  ;;  %v314_v24 = vadd.f32 %v311_v21, %v307_v22 }
 0x32f   :  { %v315_v25 = vmax.f32 %v313_v23, 0.0  ;;  %v316_v26 = vmax.f32 %v314_v24, 0.0 }
 0x331   :  { %319 = vrot.lane.b32.xlu1 %v315_v25, %s1351_s8 }
 0x335   :  { %321 = vrot.lane.b32.xlu1 %v316_v26, %s1351_s8 }
 0x3a3   :  { %v320_v27 = vpop.permute.xlu1 %319 }
 0x3a4   :  { %326 = vst.msk [vmem:[#allocation2] sm:$0xff] %vm325_vm6, %v320_v27 }
 0x3a7   :  { %v322_v28 = vpop.permute.xlu1 %321 }
 0x3a8   :  { %327 = vst.msk [vmem:[#allocation2 + $0x8] sm:$0xff] %vm325_vm6, %v322_v28 }
 0x3ab   :  { %v328_v29 = vld [vmem:[#allocation2] sm:$0xff] }
 0x3af   :  { %v329_v30 = vld [vmem:[#allocation2 + $0x8] sm:$0xff] }
 0x3b0   :  { %v1224_v31 = vpack.i.bf16 %v329_v30, %v328_v29 }
 0x3b2   :  { %1225 = vrot.lane.b32.xlu1 %v1224_v31, %s1340_s26 }
 0x3b6   :  { %1230 = vrot.lane.b32.xlu1 %v1224_v31, %s1338_s24 }
 0x3ba   :  { %1235 = vrot.lane.b32.xlu1 %v1224_v31, %s1339_s25 }
 0x3be   :  { %351 = vrot.lane.b32.xlu1 %v328_v29, %s1337_s3 }
 0x3c2   :  { %353 = vrot.lane.b32.xlu1 %v329_v30, %s1337_s3 }
 0x424   :  { %v1226_v33 = vpop.permute.xlu1 %1225 }
 0x425   :  { %v1228_v34 = vunpack.i.h.bf16 %v1226_v33  ;;  %v1227_v35 = vunpack.i.l.bf16 %v1226_v33  ;;  %v1355_v33 = vmov 6  }
 0x427   :  { %v1145_v36 = vpack.c.bf16 %v1228_v34, %v329_v30  ;;  %v1139_v37 = vpack.c.bf16 %v1227_v35, %v328_v29  ;;  %v1356_v34 = vmov 9  }
 0x428   :  { %v1231_v38 = vpop.permute.xlu1 %1230 }
 0x429   :  { %1140 = vmatpush3.bf16.msra.mxu0 %v1139_v37  ;;  %1146 = vmatpush3.bf16.msra.mxu1 %v1145_v36  ;;  %v1233_v40 = vunpack.i.h.bf16 %v1231_v38  ;;  %v1232_v41 = vunpack.i.l.bf16 %v1231_v38 }
 0x42a   :  { %1141 = vmatprep.subr.bf16.mxu0 %v1336_v0  ;;  %1147 = vmatprep.subr.bf16.mxu1 %v1336_v0 }
 0x42c   :  { %v1236_v39 = vpop.permute.xlu1 %1235 }
 0x42d   :  { %v1238_v42 = vunpack.i.h.bf16 %v1236_v39  ;;  %v1237_v43 = vunpack.i.l.bf16 %v1236_v39 }
 0x42f   :  { %v1142_v44 = vpack.c.bf16 %v1237_v43, %v1232_v41  ;;  %v1148_v45 = vpack.c.bf16 %v1238_v42, %v1233_v40  ;;  %v563_v41 = vld [vmem:[#allocation6] sm:$0xff]  ;;  %v773_v43 = vld [vmem:[%s1600_s4] sm:$0xff]  ;;  %s1361_s4 = smov [#allocation8]  }
 0x430   :  { %v352_v46 = vpop.permute.xlu1 %351  ;;  %s985_s12 = sshll.u32 %s1361_s4, 4  ;;  %s986_s12 = int_to_ptr.vmem [resolvable:$true] %s985_s12 }
 0x431   :  { %1143 = vmatpush3.bf16.msra.mxu0 %v1142_v44  ;;  %1149 = vmatpush3.bf16.msra.mxu1 %v1148_v45  ;;  %s1306_s13 = scalar_lea.vmem %s986_s12, 256  ;;  %p1311_p3 = scmp.lt.s32.totalorder %s986_s12, %s986_s12 }
 0x432   :  { %1080 = vmatprep.subr.mxu0 %v1344_v7  ;;  %1093 = vmatprep.subr.mxu1 %v1344_v7  ;;  %p1307_p2 = scmp.ne.s32.totalorder %s986_s12, %s1306_s13  ;;  %p1312_p4 = scmp.lt.s32.totalorder %s1306_s13, %s1306_s13 }
 0x434   :  { %v354_v48 = vpop.permute.xlu1 %353  ;;  %p1313_p5 = por %p1312_p4, %p1311_p3 }
 0x435   :  { %1081 = vmatpush3.msra.mxu0 %v352_v46  ;;  %1094 = vmatpush3.msra.mxu1 %v354_v48 }
 0x436   :  { %1083 = vmatmul.mubr.msk.f32.vlgmr.msra.gmra.mrb[2].mxu0 %vm361_vm7, %v330_v47  ;;  %1096 = vmatmul.mubr.msk.f32.vlgmr.msra.gmra.mrb[2].mxu1 %vm361_vm7, %v330_v47  ;;  %p1314_p6 = pnand %p1313_p5, %p1307_p2 }
 0x437   :  { %1150 = vmatprep.subr.bf16.mxu0 %v1336_v0  ;;  %1153 = vmatprep.subr.bf16.mxu1 %v1336_v0 }
 0x438   :  { %1104 = vmatprep.mubr.msk.f32.mxu0 %vm1343_vm0, %v1344_v7  ;;  %1113 = vmatprep.mubr.msk.f32.mxu1 %vm1343_vm0, %v1344_v7 }
 0x509   :  { %v431_v50 = vpop.f32.mrb[2].mxu0  ;;  %v501_v51 = vpop.f32.mrb[2].mxu1 }
 0x50a   :  { %v432_v52 = vadd.f32 %v431_v50, %v359_v49  ;;  %v502_v53 = vadd.f32 %v501_v51, %v359_v49  ;;  %v1084_v54 = vpop.f32.mrb[3].mxu0  ;;  %v1097_v55 = vpop.f32.mrb[3].mxu1 }
 0x50c   :  { %v508_v56 = vsel %vm270_vm3, %v502_v53, 0.0  ;;  %v505_v57 = vsel %vm270_vm3, %v432_v52, 0.0  ;;  %v513_v58 = vmul.f32 %v502_v53, %v502_v53  ;;  %v512_v59 = vmul.f32 %v432_v52, %v432_v52 }
 0x50d   :  { %509 = vadd.xlane.f32.xlu0 %v508_v56  ;;  %506 = vadd.xlane.f32.xlu1 %v505_v57 }
 0x50e   :  { %v517_v0 = vsel %vm270_vm3, %v513_v58, 0.0  ;;  %v514_v60 = vsel %vm270_vm3, %v512_v59, 0.0 }
 0x511   :  { %518 = vadd.xlane.f32.xlu0 %v517_v0  ;;  %515 = vadd.xlane.f32.xlu1 %v514_v60 }
 0x59a   :  { %v510_v62 = vpop.xlane.xlu0 %509  ;;  %v507_v63 = vpop.xlane.xlu1 %506 }
 0x59b   :  { %v511_v3 = vadd.f32 %v510_v62, %v507_v63 }
 0x59d   :  { %v521_v4 = vmul.f32 0.03125, %v511_v3 }
 0x59e   :  { %v519_v5 = vpop.xlane.xlu0 %518  ;;  %v516_v6 = vpop.xlane.xlu1 %515 }
 0x59f   :  { %v520_v8 = vadd.f32 %v519_v5, %v516_v6  ;;  %v523_v10 = vmul.f32 %v521_v4, %v521_v4 }
 0x5a1   :  { %v522_v11 = vmul.f32 0.03125, %v520_v8 }
 0x5a3   :  { %v524_v12 = vsub.f32 %v522_v11, %v523_v10  ;;  %v1357_v10 = vmov 7   ;;  %v1358_v11 = vmov 10  }
 0x5a5   :  { %v525_v13 = vmax.f32 %v524_v12, 0.0 }
 0x5a7   :  { %v526_v14 = vadd.f32 1e-05, %v525_v13 }
 0x5a9   :  { %1256 = vrsqrt.f32 %v526_v14 }
 0x5b3   :  { %v1257_v16 = vpop.eup %1256 }
 0x5b4   :  { %v528_v17 = vmul.f32 %v1257_v16, %v1451_v9 }
 0x5b6   :  { %537 = vperm.xlu0 %1240, %v528_v17   ;;  %v529_v18 = vmul.f32 %v528_v17, %v521_v4 }
 0x5b8   :  { %531 = vrot.lane.b32.xlu1 %v529_v18, %s1350_s5 }
 0x5ba   :  { %856 = vrot.lane.b32.xlu0 %v1433_v2, %s1339_s25 }
 0x5bb   :  { %1248 = vset.pattern.permute.xlu0 %v1356_v34 }
 0x5be   :  { %775 = vperm.xlu0 %1248, %v1451_v9  }
 0x5c2   :  { %1251 = vset.pattern.permute.xlu0 %v1358_v11 }
 0x62a   :  { %v532_v19 = vpop.permute.xlu1 %531 }
 0x62b   :  { %v534_v20 = vsub.f32 %v1451_v9, %v532_v19 }
 0x62d   :  { %544 = vperm.xlu1 %1241, %v534_v20  }
 0x631   :  { %1247 = vset.pattern.permute.xlu1 %v1355_v33 }
 0x635   :  { %v538_v21 = vpop.permute.xlu0 %537 }
 0x636   :  { %v540_v22 = vmul.f32 %v538_v21, %v432_v52  ;;  %v541_v24 = vmul.f32 %v538_v21, %v502_v53 }
 0x6ac   :  { %v545_v23 = vpop.permute.xlu1 %544 }
 0x6ad   :  { %v547_v25 = vadd.f32 %v545_v23, %v540_v22  ;;  %v548_v26 = vadd.f32 %v545_v23, %v541_v24 }
 0x6af   :  { %v549_v27 = vmax.f32 %v547_v25, 0.0  ;;  %v550_v28 = vmax.f32 %v548_v26, 0.0 }
 0x6b1   :  { %553 = vrot.lane.b32.xlu1 %v549_v27, %s1351_s8 }
 0x6b5   :  { %555 = vrot.lane.b32.xlu1 %v550_v28, %s1351_s8 }
 0x723   :  { %v554_v29 = vpop.permute.xlu1 %553 }
 0x724   :  { %559 = vst.msk [vmem:[#allocation2] sm:$0xff] %vm325_vm6, %v554_v29 }
 0x727   :  { %v556_v2 = vpop.permute.xlu1 %555 }
 0x728   :  { %560 = vst.msk [vmem:[#allocation2 + $0x8] sm:$0xff] %vm325_vm6, %v556_v2 }
 0x72b   :  { %v561_v30 = vld [vmem:[#allocation2] sm:$0xff] }
 0x72f   :  { %v562_v31 = vld [vmem:[#allocation2 + $0x8] sm:$0xff] }
 0x730   :  { %v1242_v32 = vpack.i.bf16 %v562_v31, %v561_v30 }
 0x732   :  { %1243 = vrot.lane.b32.xlu1 %v1242_v32, %s1340_s26 }
 0x736   :  { %572 = vrot.lane.b32.xlu1 %v561_v30, %s1338_s24 }
 0x73a   :  { %574 = vrot.lane.b32.xlu1 %v562_v31, %s1338_s24 }
 0x73e   :  { %778 = vrot.lane.b32.xlu1 %v1428_v1, %s1339_s25  ;;  %v857_v1 = vpop.permute.xlu0 %856 }
 0x742   :  { %579 = vperm.xlu1 %1247, %v1451_v9   ;;  %v776_v52 = vpop.permute.xlu0 %775 }
 0x746   :  { %1249 = vset.pattern.permute.xlu1 %v1357_v10 }
 0x7a4   :  { %v1244_v35 = vpop.permute.xlu1 %1243 }
 0x7a5   :  { %v1246_v36 = vunpack.i.h.bf16 %v1244_v35  ;;  %v1245_v37 = vunpack.i.l.bf16 %v1244_v35 }
 0x7a7   :  { %v1154_v38 = vpack.c.bf16 %v1246_v36, %v562_v31  ;;  %v1151_v39 = vpack.c.bf16 %v1245_v37, %v561_v30 }
 0x7a8   :  { %v573_v40 = vpop.permute.xlu1 %572 }
 0x7a9   :  { %1152 = vmatpush3.bf16.msra.mxu0 %v1151_v39  ;;  %1155 = vmatpush3.bf16.msra.mxu1 %v1154_v38 }
 0x7aa   :  { %1102 = vmatprep.subr.mxu0 %v1344_v7  ;;  %1111 = vmatprep.subr.mxu1 %v1344_v7 }
 0x7ac   :  { %v575_v42 = vpop.permute.xlu1 %574 }
 0x7ad   :  { %1103 = vmatpush3.msra.mxu0 %v573_v40  ;;  %1112 = vmatpush3.msra.mxu1 %v575_v42  ;;  %v1360_v42 = vmov 11  }
 0x7ae   :  { %1105 = vmatmul.mubr.msk.f32.vlgmr.msra.gmra.mrb[4].mxu0 %vm582_vm8, %v563_v41  ;;  %1114 = vmatmul.mubr.msk.f32.vlgmr.msra.gmra.mrb[4].mxu1 %vm582_vm8, %v563_v41  ;;  %v1359_v41 = vmov 8  }
 0x7af   :  { %1116 = vmatprep.subr.mxu0 %v1344_v7  ;;  %1121 = vmatprep.subr.mxu1 %v1344_v7 }
 0x7b0   :  { %v779_v44 = vpop.permute.xlu1 %778  ;;  %1122 = vmatpush3.msk.msra.mxu1 %vm108_vm1, %v857_v1  ;;  %1118 = vmatprep.mubr.msk.f32.mxu0 %vm1343_vm0, %v1344_v7 }
 0x7b1   :  { %1117 = vmatpush3.msk.msra.mxu0 %vm108_vm1, %v779_v44  ;;  %1123 = vmatprep.mubr.msk.f32.mxu1 %vm1343_vm0, %v1344_v7 }
 0x7b2   :  { %1119 = vmatmul.mubr.msk.f32.vlgmr.msra.gmra.mrb[6].mxu0 %vm780_vm9, %v773_v43  ;;  %1124 = vmatmul.mubr.msk.f32.vlgmr.msra.gmra.mrb[6].mxu1 %vm780_vm9, %v773_v43 }
 0x7c1   :  { %v580_v45 = vpop.permute.xlu1 %579 }
 0x881   :  { %v652_v46 = vpop.f32.mrb[4].mxu0  ;;  %v722_v47 = vpop.f32.mrb[4].mxu1 }
 0x882   :  { %v1544_v48 = vadd.f32 %v652_v46, %v580_v45  ;;  %v1546_v49 = vadd.f32 %v722_v47, %v580_v45  ;;  %v1106_v50 = vpop.f32.mrb[5].mxu0  ;;  %v1115_v51 = vpop.f32.mrb[5].mxu1 }
 0x884   :  { %v730_v53 = vsel %vm726_vm10, %v1546_v49, 0.0  ;;  %v727_v54 = vsel %vm726_vm10, %v1544_v48, 0.0  ;;  %v735_v7 = vmul.f32 %v1546_v49, %v1546_v49  ;;  %v734_v55 = vmul.f32 %v1544_v48, %v1544_v48 }
 0x885   :  { %731 = vadd.xlane.f32.xlu0 %v730_v53  ;;  %728 = vadd.xlane.f32.xlu1 %v727_v54  ;;  %v926_v56 = vpop.f32.mrb[6].mxu1  ;;  %v852_v57 = vpop.f32.mrb[6].mxu0 }
 0x886   :  { %v1556_v58 = vadd.f32 %v926_v56, %v776_v52  ;;  %v1558_v59 = vadd.f32 %v852_v57, %v776_v52  ;;  %v1120_v0 = vpop.f32.mrb[7].mxu0  ;;  %v1125_v60 = vpop.f32.mrb[7].mxu1  ;;  %v739_v61 = vsel %vm726_vm10, %v735_v7, 0.0  ;;  %v736_v62 = vsel %vm726_vm10, %v734_v55, 0.0 }
 0x888   :  { %v933_v63 = vsel %vm726_vm10, %v1556_v58, 0.0  ;;  %v930_v3 = vsel %vm726_vm10, %v1558_v59, 0.0  ;;  %v938_v4 = vmul.f32 %v1556_v58, %v1556_v58  ;;  %v937_v5 = vmul.f32 %v1558_v59, %v1558_v59 }
 0x889   :  { %740 = vadd.xlane.f32.xlu0 %v739_v61  ;;  %737 = vadd.xlane.f32.xlu1 %v736_v62 }
 0x88a   :  { %v942_v6 = vsel %vm726_vm10, %v938_v4, 0.0  ;;  %v939_v8 = vsel %vm726_vm10, %v937_v5, 0.0 }
 0x88d   :  { %934 = vadd.xlane.f32.xlu0 %v933_v63  ;;  %931 = vadd.xlane.f32.xlu1 %v930_v3 }
 0x891   :  { %943 = vadd.xlane.f32.xlu0 %v942_v6  ;;  %940 = vadd.xlane.f32.xlu1 %v939_v8 }
 0x912   :  { %v732_v12 = vpop.xlane.xlu0 %731  ;;  %v729_v13 = vpop.xlane.xlu1 %728 }
 0x913   :  { %v733_v14 = vadd.f32 %v732_v12, %v729_v13 }
 0x915   :  { %v743_v15 = vmul.f32 0.027777778, %v733_v14 }
 0x916   :  { %v741_v16 = vpop.xlane.xlu0 %740  ;;  %v738_v17 = vpop.xlane.xlu1 %737 }
 0x917   :  { %v742_v18 = vadd.f32 %v741_v16, %v738_v17  ;;  %v745_v19 = vmul.f32 %v743_v15, %v743_v15 }
 0x919   :  { %v744_v20 = vmul.f32 0.027777778, %v742_v18 }
 0x91a   :  { %v935_v21 = vpop.xlane.xlu0 %934  ;;  %v932_v22 = vpop.xlane.xlu1 %931 }
 0x91b   :  { %v746_v23 = vsub.f32 %v744_v20, %v745_v19  ;;  %v936_v24 = vadd.f32 %v935_v21, %v932_v22 }
 0x91d   :  { %v747_v25 = vmax.f32 %v746_v23, 0.0  ;;  %v946_v26 = vmul.f32 0.027777778, %v936_v24 }
 0x91e   :  { %v944_v27 = vpop.xlane.xlu0 %943  ;;  %v941_v28 = vpop.xlane.xlu1 %940 }
 0x91f   :  { %v748_v29 = vadd.f32 1e-05, %v747_v25  ;;  %v945_v2 = vadd.f32 %v944_v27, %v941_v28  ;;  %v948_v30 = vmul.f32 %v946_v26, %v946_v26 }
 0x921   :  { %1258 = vrsqrt.f32 %v748_v29  ;;  %v947_v31 = vmul.f32 0.027777778, %v945_v2 }
 0x923   :  { %v949_v32 = vsub.f32 %v947_v31, %v948_v30 }
 0x925   :  { %v950_v33 = vmax.f32 %v949_v32, 0.0 }
 0x927   :  { %v951_v34 = vadd.f32 1e-05, %v950_v33 }
 0x929   :  { %1260 = vrsqrt.f32 %v951_v34 }
 0x92b   :  { %v1259_v35 = vpop.eup %1258 }
 0x92c   :  { %v750_v36 = vmul.f32 %v1259_v35, %v1451_v9 }
 0x92e   :  { %v751_v37 = vmul.f32 %v750_v36, %v743_v15 }
 0x930   :  { %753 = vrot.lane.b32.xlu1 %v751_v37, %s1350_s5 }
 0x933   :  { %v1261_v38 = vpop.eup %1260 }
 0x934   :  { %759 = vperm.xlu1 %1249, %v750_v36   ;;  %v953_v39 = vmul.f32 %v1261_v38, %v1451_v9 }
 0x936   :  { %v954_v40 = vmul.f32 %v953_v39, %v946_v26 }
 0x938   :  { %956 = vrot.lane.b32.xlu0 %v954_v40, %s1350_s5  ;;  %1250 = vset.pattern.permute.xlu1 %v1359_v41 }
 0x93c   :  { %962 = vperm.xlu0 %1251, %v953_v39  }
 0x940   :  { %1253 = vset.pattern.permute.xlu0 %v1360_v42 }
 0x9a2   :  { %v754_v1 = vpop.permute.xlu1 %753 }
 0x9a3   :  { %v756_v43 = vsub.f32 %v1451_v9, %v754_v1 }
 0x9a5   :  { %766 = vperm.xlu1 %1250, %v756_v43  }
 0x9a9   :  { %1252 = vset.pattern.permute.xlu1 %v1360_v42 }
 0x9aa   :  { %v957_v44 = vpop.permute.xlu0 %956 }
 0x9ab   :  { %v959_v45 = vsub.f32 %v1451_v9, %v957_v44 }
 0x9ad   :  { %969 = vperm.xlu1 %1252, %v959_v45  }
 0x9b3   :  { %v760_v46 = vpop.permute.xlu1 %759 }
 0x9b4   :  { %v762_v50 = vmul.f32 %v760_v46, %v1544_v48  ;;  %v763_v51 = vmul.f32 %v760_v46, %v1546_v49 }
 0x9bb   :  { %v963_v52 = vpop.permute.xlu0 %962 }
 0x9bc   :  { %v965_v7 = vmul.f32 %v963_v52, %v1558_v59  ;;  %v966_v55 = vmul.f32 %v963_v52, %v1556_v58 }
 0xa24   :  { %v767_v47 = vpop.permute.xlu1 %766 }
 0xa25   :  { %v769_v53 = vadd.f32 %v767_v47, %v762_v50  ;;  %v770_v54 = vadd.f32 %v767_v47, %v763_v51 }
 0xa27   :  { %v771_v57 = vmax.f32 %v769_v53, 0.0  ;;  %v772_v0 = vmax.f32 %v770_v54, 0.0 }
 0xa2c   :  { %v970_v56 = vpop.permute.xlu1 %969 }
 0xa2d   :  { %v972_v60 = vadd.f32 %v970_v56, %v965_v7  ;;  %v973_v61 = vadd.f32 %v970_v56, %v966_v55 }
 0xa2f   :  { %v974_v9 = vadd.f32 %v972_v60, %v771_v57  ;;  %v975_v62 = vadd.f32 %v973_v61, %v772_v0 }
 0xa31   :  { %v976_v48 = vmax.f32 %v974_v9, 0.0  ;;  %v977_v63 = vmax.f32 %v975_v62, 0.0 }
 0xa33   :  { %978 = vst.msk [vmem:[#allocation8] sm:$0xff] %vm726_vm10, %v976_v48  ;;  %979 = vst.msk [vmem:[#allocation8 + $0x8] sm:$0xff] %vm726_vm10, %v977_v63 }
 0xa34   :  { %1317 = shalt.err (!%p1314_p6)
}
 0xa35   :  { %s1318_s16 = scalar_lea.hbm %s1602_s6, 256 }
 0xa36   :  { %p1319_p7 = scmp.ne.s32.totalorder %s1602_s6, %s1318_s16  ;;  %p1322_p8 = scmp.lt.u32.totalorder %s1318_s16, %s1602_s6 }
 0xa38   :  { %p1324_p9 = pnand %p1322_p8, %p1319_p7 }
 0xa3a   :  { %1327 = shalt.err (!%p1324_p9)
}
 0xa3b   :  { %s1362_s20 = smov 128   ;;  %s1363_s21 = smov 8  }
 0xa3c   :  { %991 = dma.vmem_to_hbm [thread:$0]  %s986_s12, 256, %s1602_s6, [#allocation5], %s1362_s20, %s1362_s20, %s1363_s21  }
 0xa3d   :  { %1332 = dma.done.wait [#allocation5], 256  }
 0xa3e   :  { %1333 = vsyncadd [#allocation5], 4294967040 }
 0xa3f   :  { %995 = vsyncpa [#allocation4], 1 }
 0xa40   :  { %996 = vsyncpa [#allocation7], 1 }
 0xa41   :  { %997 = vsyncpa [#allocation5], 1 }

</bundles_post_ra>
